<compile_context>
chip_gen: v7x
topology: tpu7x:2x2x1
jax: 0.10.0
libtpu: 0.0.40
codegen_flags: <defaults>
</compile_context>

<pallas_src>
import jax
import jax.numpy as jnp
from jax.experimental import pallas as pl
from jax.experimental.pallas import tpu as pltpu

K = 7            # conv kernel width along sequence
PAD = 3          # "same" padding
C_IN = 1024      # embedding dim (fixed by the module)
C_HID = 32       # elmo_feature_extractor output channels
C_OUT = 13       # 3 (dssp3) + 8 (dssp8) + 2 (diso), concatenated
C_OUT_PAD = 128  # lane-dense output width (first C_OUT lanes are real)
OFF = 8          # sublane-aligned interior offset inside the halo scratches


def convnet_kernel(x_ref, w1f_ref, b1_ref, whf_ref, bh_ref, out_ref,
                   y_ref, h_ref):
    """One grid step == one batch element.

    x_ref  : (L, C_IN)               un-padded input rows (f32 or bf16)
    w1f_ref: (C_IN, K*C_HID)  bf16   conv1 taps fused along N (1024 x 224)
    b1_ref : (1, C_HID)       f32
    whf_ref: (K*C_HID, 128)   bf16   flattened heads, lane-padded to 128
    bh_ref : (1, 128)         f32    head biases, lane-padded
    out_ref: (L, 128)         f32    lane-dense output (first 13 lanes real)
    y_ref  : (L+16, K*C_HID)  f32    scratch: conv1 per-tap products + halo
    h_ref  : (L+16, C_HID)    f32    scratch: hidden activations + halo
    """
    L = out_ref.shape[0]

    # --- Conv2d(1024, 32, (7,1), pad (3,0)): one fused MXU push (N=224) -----
    xb = x_ref[...].astype(jnp.bfloat16)
    y = jnp.dot(xb, w1f_ref[...], preferred_element_type=jnp.float32)  # (L, 224)

    # Zero the halo rows (aligned 8-row stores, negligible; done every step so
    # correctness does not depend on which TensorCore ran program_id == 0).
    zero_y = jnp.zeros((OFF, K * C_HID), jnp.float32)
    y_ref[pl.ds(0, OFF), :] = zero_y
    y_ref[pl.ds(L + OFF, OFF), :] = zero_y
    y_ref[pl.ds(OFF, L), :] = y                      # sublane-aligned store

    # Tap sum: h[l] = sum_k y_pad[l + k, k*32:(k+1)*32]
    acc = y_ref[pl.ds(OFF - PAD, L), 0:C_HID]
    for k in range(1, K):                            # static unroll, 6 adds
        acc = acc + y_ref[pl.ds(OFF - PAD + k, L), k * C_HID:(k + 1) * C_HID]
    h = jnp.maximum(acc + b1_ref[...], 0.0)          # bias + ReLU
    # TODO(synk): Dropout(0.25) is identity in eval/inference mode (no RNG here).

    # --- three Conv2d(32, {3,8,2}, (7,1), pad (3,0)) heads, fully fused -----
    zero_h = jnp.zeros((OFF, C_HID), jnp.float32)
    h_ref[pl.ds(0, OFF), :] = zero_h
    h_ref[pl.ds(L + OFF, OFF), :] = zero_h
    h_ref[pl.ds(OFF, L), :] = h                      # sublane-aligned store

    # Build the 7-tap window along lanes -> (L, 224), then one MXU push.
    window = jnp.concatenate(
        [h_ref[pl.ds(OFF - PAD + k, L), :] for k in range(K)], axis=-1)
    z = jnp.dot(window.astype(jnp.bfloat16), whf_ref[...],
                preferred_element_type=jnp.float32)  # (L, 128) lane-dense
    out_ref[...] = z + bh_ref[...]


def convnet_forward(x, w1, b1, wh, bh):
    """x: (B, L, 1024) -> (d3 (B,L,3), d8 (B,L,8), diso (B,L,2))."""
    B, L, _ = x.shape

    # Fused weights built once in the wrapper (not traced per grid step).
    # w1[k] corresponds to torch conv1.weight[:, :, k, 0].T  -> (C_IN, C_HID).
    w1_fused = jnp.transpose(w1, (1, 0, 2)).reshape(C_IN, K * C_HID)
    w1_fused = w1_fused.astype(jnp.bfloat16)                       # (1024, 224)
    wh_fused = jnp.zeros((K * C_HID, C_OUT_PAD), jnp.float32)
    wh_fused = wh_fused.at[:, :C_OUT].set(wh.reshape(K * C_HID, C_OUT))
    wh_fused = wh_fused.astype(jnp.bfloat16)                       # (224, 128)
    b1_row = b1.reshape(1, C_HID).astype(jnp.float32)
    bh_pad = jnp.zeros((1, C_OUT_PAD), jnp.float32).at[0, :C_OUT].set(bh)

    # VMEM budget: double-buffered x/out blocks + weights + halo scratches.
    vmem_needed = (
        2 * L * C_IN * x.dtype.itemsize
        + 2 * L * C_OUT_PAD * 4
        + 2 * (C_IN * K * C_HID + K * C_HID * C_OUT_PAD) * 2
        + (L + 16) * (K * C_HID + C_HID) * 4
        + (4 << 20)
    )
    vmem_limit = int(min(max(vmem_needed, 32 * 1024 * 1024), 64 * 1024 * 1024))
    # TODO(synk): for very long sequences on v7x (64 MiB VMEM / 2 TCs), tile L
    # with a 6-row halo via manual DMA instead of one full-L block per step.

    out = pl.pallas_call(
        convnet_kernel,
        out_shape=jax.ShapeDtypeStruct((B, L, C_OUT_PAD), jnp.float32),
        grid_spec=pltpu.PrefetchScalarGridSpec(
            num_scalar_prefetch=0,
            grid=(B,),
            in_specs=[
                pl.BlockSpec((None, L, C_IN), lambda b: (b, 0, 0)),
                pl.BlockSpec((C_IN, K * C_HID), lambda b: (0, 0)),
                pl.BlockSpec((1, C_HID), lambda b: (0, 0)),
                pl.BlockSpec((K * C_HID, C_OUT_PAD), lambda b: (0, 0)),
                pl.BlockSpec((1, C_OUT_PAD), lambda b: (0, 0)),
            ],
            out_specs=pl.BlockSpec((None, L, C_OUT_PAD), lambda b: (b, 0, 0)),
            scratch_shapes=[
                pltpu.VMEM((L + 2 * OFF, K * C_HID), jnp.float32),
                pltpu.VMEM((L + 2 * OFF, C_HID), jnp.float32),
            ],
        ),
        compiler_params=pltpu.CompilerParams(
            dimension_semantics=("parallel",),
            vmem_limit_bytes=vmem_limit),
    )(x, w1_fused, b1_row, wh_fused, bh_pad)

    d3 = out[..., 0:3]
    d8 = out[..., 3:11]
    diso = out[..., 11:13]
    return d3, d8, diso


def ref_forward(x, w1, b1, wh, bh):
    """Pure-JAX reference (matmul inputs rounded to bf16 like the kernel)."""
    B, L, _ = x.shape
    xb = x.astype(jnp.bfloat16).astype(jnp.float32)
    w1b = w1.astype(jnp.bfloat16).astype(jnp.float32)
    whb = wh.astype(jnp.bfloat16).astype(jnp.float32)
    xp = jnp.pad(xb, ((0, 0), (PAD, PAD), (0, 0)))
    h = jnp.zeros((B, L, C_HID), jnp.float32)
    for k in range(K):
        h = h + jnp.einsum('bld,dc->blc', xp[:, k:k + L], w1b[k])
    h = jnp.maximum(h + b1, 0.0)
    hb = h.astype(jnp.bfloat16).astype(jnp.float32)
    hp = jnp.pad(hb, ((0, 0), (PAD, PAD), (0, 0)))
    o = jnp.zeros((B, L, C_OUT), jnp.float32)
    for k in range(K):
        o = o + jnp.einsum('blc,co->blo', hp[:, k:k + L], whb[k])
    o = o + bh
    return o[..., :3], o[..., 3:11], o[..., 11:]


if __name__ == "__main__":
    key = jax.random.PRNGKey(0)
    kx, k1, k2, k3, k4 = jax.random.split(key, 5)

    B, L = 2, 16
    x = jax.random.normal(kx, (B, L, C_IN), jnp.float32)

    # Deterministic synthetic parameters (shapes follow the module's __init__).
    # w1[k] == torch conv1.weight[:, :, k, 0].T, i.e. (C_in, C_out).
    w1 = jax.random.normal(k1, (K, C_IN, C_HID), jnp.float32) * 0.02
    b1 = jax.random.normal(k2, (C_HID,), jnp.float32) * 0.02
    # Heads concatenated along output channels: [dssp3 (3) | dssp8 (8) | diso (2)].
    wh = jax.random.normal(k3, (K, C_HID, C_OUT), jnp.float32) * 0.1
    bh = jax.random.normal(k4, (C_OUT,), jnp.float32) * 0.1

    d3, d8, diso = jax.block_until_ready(convnet_forward(x, w1, b1, wh, bh))
    rd3, rd8, rdiso = ref_forward(x, w1, b1, wh, bh)

    assert d3.shape == (B, L, 3)
    assert d8.shape == (B, L, 8)
    assert diso.shape == (B, L, 2)
    for got, want in ((d3, rd3), (d8, rd8), (diso, rdiso)):
        assert jnp.allclose(got, want, atol=1e-2, rtol=1e-2), \
            float(jnp.max(jnp.abs(got - want)))

    print("KERNEL_OK")
</pallas_src>

<mosaic_0001>
module attributes {stable_mosaic.version = 11 : i64} {
  func.func @convnet_kernel(%arg0: i32, %arg1: memref<1x16x1024xf32, #tpu.memory_space<vmem>>, %arg2: memref<1024x224xbf16, #tpu.memory_space<vmem>>, %arg3: memref<1x32xf32, #tpu.memory_space<vmem>>, %arg4: memref<224x128xbf16, #tpu.memory_space<vmem>>, %arg5: memref<1x128xf32, #tpu.memory_space<vmem>>, %arg6: memref<1x16x128xf32, #tpu.memory_space<vmem>>, %arg7: memref<32x224xf32, #tpu.memory_space<vmem>>, %arg8: memref<32x32xf32, #tpu.memory_space<vmem>>) attributes {dimension_semantics = [#tpu.dimension_semantics<parallel>], iteration_bounds = array<i64: 2>, scalar_prefetch = 0 : i64, scratch_operands = 2 : i64, tpu.core_type = #tpu.core_type<tc>, window_params = [{transform_indices = @transform_0, window_bounds = array<i64: 1, 16, 1024>}, {pipeline_mode = #tpu.pipeline_mode<synchronous>, transform_indices = @transform_1, window_bounds = array<i64: 1024, 224>}, {pipeline_mode = #tpu.pipeline_mode<synchronous>, transform_indices = @transform_2, window_bounds = array<i64: 1, 32>}, {pipeline_mode = #tpu.pipeline_mode<synchronous>, transform_indices = @transform_3, window_bounds = array<i64: 224, 128>}, {pipeline_mode = #tpu.pipeline_mode<synchronous>, transform_indices = @transform_4, window_bounds = array<i64: 1, 128>}, {transform_indices = @transform_5, window_bounds = array<i64: 1, 16, 128>}]} {
    %c0 = arith.constant 0 : index
    %c0_0 = arith.constant 0 : index
    %c0_1 = arith.constant 0 : index
    %0 = vector.load %arg1[%c0, %c0_0, %c0_1] : memref<1x16x1024xf32, #tpu.memory_space<vmem>>, vector<1x16x1024xf32>
    %1 = vector.shape_cast %0 : vector<1x16x1024xf32> to vector<16x1024xf32>
    %2 = arith.truncf %1 : vector<16x1024xf32> to vector<16x1024xbf16>
    %c0_2 = arith.constant 0 : index
    %c0_3 = arith.constant 0 : index
    %3 = vector.load %arg2[%c0_2, %c0_3] : memref<1024x224xbf16, #tpu.memory_space<vmem>>, vector<1024x224xbf16>
    %cst = arith.constant dense<0.000000e+00> : vector<16x224xf32>
    %4 = tpu.matmul %2, %3, %cst {dimension_numbers = #tpu.dot_dimension_numbers<[1], [0], [0], [1], [0, 0, 1, 1], [], []>} : vector<16x1024xbf16>, vector<1024x224xbf16>, vector<16x224xf32> -> vector<16x224xf32>
    %cst_4 = arith.constant 0.000000e+00 : f32
    %5 = vector.broadcast %cst_4 : f32 to vector<8x224xf32>
    %c0_5 = arith.constant 0 : index
    %c0_6 = arith.constant 0 : index
    %6 = vector.load %arg7[%c0_5, %c0_6] : memref<32x224xf32, #tpu.memory_space<vmem>>, vector<8x224xf32>
    tpu.vector_store %arg7[%c0_5, %c0_6], %5 {strides = array<i32>} : memref<32x224xf32, #tpu.memory_space<vmem>>, vector<8x224xf32>,
    %c24 = arith.constant 24 : index
    %c0_7 = arith.constant 0 : index
    %7 = vector.load %arg7[%c24, %c0_7] : memref<32x224xf32, #tpu.memory_space<vmem>>, vector<8x224xf32>
    tpu.vector_store %arg7[%c24, %c0_7], %5 {strides = array<i32>} : memref<32x224xf32, #tpu.memory_space<vmem>>, vector<8x224xf32>,
    %c8 = arith.constant 8 : index
    %c0_8 = arith.constant 0 : index
    %8 = vector.load %arg7[%c8, %c0_8] : memref<32x224xf32, #tpu.memory_space<vmem>>, vector<16x224xf32>
    tpu.vector_store %arg7[%c8, %c0_8], %4 {strides = array<i32>} : memref<32x224xf32, #tpu.memory_space<vmem>>, vector<16x224xf32>,
    %c5 = arith.constant 5 : index
    %c0_9 = arith.constant 0 : index
    %9 = vector.load %arg7[%c5, %c0_9] : memref<32x224xf32, #tpu.memory_space<vmem>>, vector<16x32xf32>
    %c6 = arith.constant 6 : index
    %c32 = arith.constant 32 : index
    %10 = vector.load %arg7[%c6, %c32] : memref<32x224xf32, #tpu.memory_space<vmem>>, vector<16x32xf32>
    %11 = arith.addf %9, %10 : vector<16x32xf32>
    %c7 = arith.constant 7 : index
    %c64 = arith.constant 64 : index
    %12 = vector.load %arg7[%c7, %c64] : memref<32x224xf32, #tpu.memory_space<vmem>>, vector<16x32xf32>
    %13 = arith.addf %11, %12 : vector<16x32xf32>
    %c8_10 = arith.constant 8 : index
    %c96 = arith.constant 96 : index
    %14 = vector.load %arg7[%c8_10, %c96] : memref<32x224xf32, #tpu.memory_space<vmem>>, vector<16x32xf32>
    %15 = arith.addf %13, %14 : vector<16x32xf32>
    %c9 = arith.constant 9 : index
    %c128 = arith.constant 128 : index
    %16 = vector.load %arg7[%c9, %c128] : memref<32x224xf32, #tpu.memory_space<vmem>>, vector<16x32xf32>
    %17 = arith.addf %15, %16 : vector<16x32xf32>
    %c10 = arith.constant 10 : index
    %c160 = arith.constant 160 : index
    %18 = vector.load %arg7[%c10, %c160] : memref<32x224xf32, #tpu.memory_space<vmem>>, vector<16x32xf32>
    %19 = arith.addf %17, %18 : vector<16x32xf32>
    %c11 = arith.constant 11 : index
    %c192 = arith.constant 192 : index
    %20 = vector.load %arg7[%c11, %c192] : memref<32x224xf32, #tpu.memory_space<vmem>>, vector<16x32xf32>
    %21 = arith.addf %19, %20 : vector<16x32xf32>
    %c0_11 = arith.constant 0 : index
    %c0_12 = arith.constant 0 : index
    %22 = vector.load %arg3[%c0_11, %c0_12] : memref<1x32xf32, #tpu.memory_space<vmem>>, vector<1x32xf32>
    %23 = vector.broadcast %22 : vector<1x32xf32> to vector<16x32xf32>
    %24 = arith.addf %21, %23 : vector<16x32xf32>
    %cst_13 = arith.constant 0.000000e+00 : f32
    %25 = vector.broadcast %cst_13 : f32 to vector<16x32xf32>
    %26 = arith.maximumf %24, %25 : vector<16x32xf32>
    %cst_14 = arith.constant 0.000000e+00 : f32
    %27 = vector.broadcast %cst_14 : f32 to vector<8x32xf32>
    %c0_15 = arith.constant 0 : index
    %c0_16 = arith.constant 0 : index
    %28 = vector.load %arg8[%c0_15, %c0_16] : memref<32x32xf32, #tpu.memory_space<vmem>>, vector<8x32xf32>
    tpu.vector_store %arg8[%c0_15, %c0_16], %27 {strides = array<i32>} : memref<32x32xf32, #tpu.memory_space<vmem>>, vector<8x32xf32>,
    %c24_17 = arith.constant 24 : index
    %c0_18 = arith.constant 0 : index
    %29 = vector.load %arg8[%c24_17, %c0_18] : memref<32x32xf32, #tpu.memory_space<vmem>>, vector<8x32xf32>
    tpu.vector_store %arg8[%c24_17, %c0_18], %27 {strides = array<i32>} : memref<32x32xf32, #tpu.memory_space<vmem>>, vector<8x32xf32>,
    %c8_19 = arith.constant 8 : index
    %c0_20 = arith.constant 0 : index
    %30 = vector.load %arg8[%c8_19, %c0_20] : memref<32x32xf32, #tpu.memory_space<vmem>>, vector<16x32xf32>
    tpu.vector_store %arg8[%c8_19, %c0_20], %26 {strides = array<i32>} : memref<32x32xf32, #tpu.memory_space<vmem>>, vector<16x32xf32>,
    %c5_21 = arith.constant 5 : index
    %c0_22 = arith.constant 0 : index
    %31 = vector.load %arg8[%c5_21, %c0_22] : memref<32x32xf32, #tpu.memory_space<vmem>>, vector<16x32xf32>
    %c6_23 = arith.constant 6 : index
    %c0_24 = arith.constant 0 : index
    %32 = vector.load %arg8[%c6_23, %c0_24] : memref<32x32xf32, #tpu.memory_space<vmem>>, vector<16x32xf32>
    %c7_25 = arith.constant 7 : index
    %c0_26 = arith.constant 0 : index
    %33 = vector.load %arg8[%c7_25, %c0_26] : memref<32x32xf32, #tpu.memory_space<vmem>>, vector<16x32xf32>
    %c8_27 = arith.constant 8 : index
    %c0_28 = arith.constant 0 : index
    %34 = vector.load %arg8[%c8_27, %c0_28] : memref<32x32xf32, #tpu.memory_space<vmem>>, vector<16x32xf32>
    %c9_29 = arith.constant 9 : index
    %c0_30 = arith.constant 0 : index
    %35 = vector.load %arg8[%c9_29, %c0_30] : memref<32x32xf32, #tpu.memory_space<vmem>>, vector<16x32xf32>
    %c10_31 = arith.constant 10 : index
    %c0_32 = arith.constant 0 : index
    %36 = vector.load %arg8[%c10_31, %c0_32] : memref<32x32xf32, #tpu.memory_space<vmem>>, vector<16x32xf32>
    %c11_33 = arith.constant 11 : index
    %c0_34 = arith.constant 0 : index
    %37 = vector.load %arg8[%c11_33, %c0_34] : memref<32x32xf32, #tpu.memory_space<vmem>>, vector<16x32xf32>
    %38 = tpu.concatenate %31, %32, %33, %34, %35, %36, %37 in 1 : vector<16x32xf32>, vector<16x32xf32>, vector<16x32xf32>, vector<16x32xf32>, vector<16x32xf32>, vector<16x32xf32>, vector<16x32xf32> -> vector<16x224xf32>
    %39 = arith.truncf %38 : vector<16x224xf32> to vector<16x224xbf16>
    %c0_35 = arith.constant 0 : index
    %c0_36 = arith.constant 0 : index
    %40 = vector.load %arg4[%c0_35, %c0_36] : memref<224x128xbf16, #tpu.memory_space<vmem>>, vector<224x128xbf16>
    %cst_37 = arith.constant dense<0.000000e+00> : vector<16x128xf32>
    %41 = tpu.matmul %39, %40, %cst_37 {dimension_numbers = #tpu.dot_dimension_numbers<[1], [0], [0], [1], [0, 0, 1, 1], [], []>} : vector<16x224xbf16>, vector<224x128xbf16>, vector<16x128xf32> -> vector<16x128xf32>
    %c0_38 = arith.constant 0 : index
    %c0_39 = arith.constant 0 : index
    %42 = vector.load %arg5[%c0_38, %c0_39] : memref<1x128xf32, #tpu.memory_space<vmem>>, vector<1x128xf32>
    %43 = vector.broadcast %42 : vector<1x128xf32> to vector<16x128xf32>
    %44 = arith.addf %41, %43 : vector<16x128xf32>
    %c0_40 = arith.constant 0 : index
    %c0_41 = arith.constant 0 : index
    %c0_42 = arith.constant 0 : index
    %45 = vector.load %arg6[%c0_40, %c0_41, %c0_42] : memref<1x16x128xf32, #tpu.memory_space<vmem>>, vector<1x16x128xf32>
    %46 = vector.shape_cast %45 : vector<1x16x128xf32> to vector<16x128xf32>
    %47 = vector.shape_cast %44 : vector<16x128xf32> to vector<1x16x128xf32>
    tpu.vector_store %arg6[%c0_40, %c0_41, %c0_42], %47 {strides = array<i32>} : memref<1x16x128xf32, #tpu.memory_space<vmem>>, vector<1x16x128xf32>,
    return
  }
  func.func @transform_0(%arg0: i32) -> (i32, i32, i32) {
    %c0_i32 = arith.constant 0 : i32
    %c0_i32_0 = arith.constant 0 : i32
    %c0_i32_1 = arith.constant 0 : i32
    return %arg0, %c0_i32, %c0_i32_0 : i32, i32, i32
  }
  func.func @transform_1(%arg0: i32) -> (i32, i32) {
    %c0_i32 = arith.constant 0 : i32
    %c0_i32_0 = arith.constant 0 : i32
    %c0_i32_1 = arith.constant 0 : i32
    return %c0_i32, %c0_i32_0 : i32, i32
  }
  func.func @transform_2(%arg0: i32) -> (i32, i32) {
    %c0_i32 = arith.constant 0 : i32
    %c0_i32_0 = arith.constant 0 : i32
    %c0_i32_1 = arith.constant 0 : i32
    return %c0_i32, %c0_i32_0 : i32, i32
  }
  func.func @transform_3(%arg0: i32) -> (i32, i32) {
    %c0_i32 = arith.constant 0 : i32
    %c0_i32_0 = arith.constant 0 : i32
    %c0_i32_1 = arith.constant 0 : i32
    return %c0_i32, %c0_i32_0 : i32, i32
  }
  func.func @transform_4(%arg0: i32) -> (i32, i32) {
    %c0_i32 = arith.constant 0 : i32
    %c0_i32_0 = arith.constant 0 : i32
    %c0_i32_1 = arith.constant 0 : i32
    return %c0_i32, %c0_i32_0 : i32, i32
  }
  func.func @transform_5(%arg0: i32) -> (i32, i32, i32) {
    %c0_i32 = arith.constant 0 : i32
    %c0_i32_0 = arith.constant 0 : i32
    %c0_i32_1 = arith.constant 0 : i32
    return %arg0, %c0_i32, %c0_i32_0 : i32, i32, i32
  }
}

</mosaic_0001>

<bundles_post_ra>
// kernel: tpu_custom_call.1
= control target key start
LH: loop header
LB: loop body
LE: loop exit
PB: predicated region body
PF: predicated region fallthrough
CT: control target
= control target key end

     0   :  { %10 = vsyncpa [#allocation5], 0  ;;  %s2823_s0 = inlined_call_operand.vmem [shape: f32[2,16,1024], index: 0, kind: input, shape index: {}]   ;;  %s2824_s1 = inlined_call_operand.vmem [shape: bf16[1024,224], index: 1, kind: input, shape index: {}]   ;;  %s2825_s2 = inlined_call_operand.vmem [shape: f32[1,32], index: 2, kind: input, shape index: {}]   ;;  %s2826_s3 = inlined_call_operand.vmem [shape: bf16[224,128], index: 3, kind: input, shape index: {}]   ;;  %s2827_s4 = inlined_call_operand.vmem [shape: f32[1,128], index: 4, kind: input, shape index: {}]   ;;  %s2828_s5 = inlined_call_operand.hbm [shape: f32[2,16,128], index: 5, kind: output, shape index: {}]  }
   0x1   :  { %12 = vsyncpa [#allocation5 + $0x1], 0  ;;  %s2204_s18 = smov 0   ;;  %s2206_s19 = smov 0  }
   0x2   :  { %s2208_s20 = smov 0   ;;  %s2210_s21 = smov 0  }
   0x3 LB: > { %s2225_s22 = sadd.s32 4294967295, %s2164_s21   ;;  %s1654_s23 = sadd.s32 4294967294, %s2164_s21   ;;  %s2164_s21 = sphi %s2210_s21, %s2834_s21   ;;  %s2160_s20 = sphi %s2208_s20, %s2833_s20   ;;  %s2156_s19 = sphi %s2206_s19, %s2832_s19   ;;  %s2152_s18 = sphi %s2204_s18, %s2831_s18  }
   0x4   : > { %s2229_s24 = sadd.s32 1, %s2164_s21   ;;  %s135_s25 = sadd.s32 1, %s2160_s20 }
   0x5   : > { %s132_s26 = ssub.s32 %s2164_s21, %s2229_s24  ;;  %p145_p0 = scmp.ne.s32.totalorder %s2160_s20, %s2156_s19 }
   0x6   : > { %p133_p1 = scmp.eq.s32.totalorder %s132_s26, 0  ;;  %p146_p2 = scmp.eq.s32.totalorder %s2225_s22, 1 }
   0x7   : > { %p151_p3 = scmp.ne.s32.totalorder %s2156_s19, %s2152_s18  ;;  %p152_p4 = scmp.eq.s32.totalorder %s1654_s23, 1 }
   0x8   : > { %s2240_s27 = scalar_select %p133_p1, %s2160_s20, %s135_s25  }
   0x9   : > { %p2242_p5 = por %p146_p2, %p145_p0  ;;  %p2246_p6 = por %p152_p4, %p151_p3 }
   0xa   : > { %p1657_p7 = scmp.ge.s32.totalorder %s2164_s21, 1  ;;  %p190_p8 = scmp.lt.s32.totalorder %s2164_s21, 3 }
   0xc   : > { %p191_p9 = pnand %p1657_p7, %p190_p8 }
   0xd   : > { %v1896_v0 = vld [vmem:[%s2824_s1 + $0x4] ss:$8 sps:$4 sm:$0xff] (!%p191_p9)   ;;  %v1900_v2 = vld [vmem:[%s2824_s1] ss:$8 sps:$4 sm:$0xff] (!%p191_p9)   ;;  %v1902_v4 = vld [vmem:[%s2824_s1 + $0x14] ss:$8 sps:$4 sm:$0xff] (!%p191_p9)  }
   0xe   : > { %194 = sbr.rel (%p191_p9) target bundleno = 881 (0x371), region = 40  ;;  %v1898_v1 = vld [vmem:[%s2824_s1 + $0x204] ss:$8 sps:$4 sm:$0xff] (!%p191_p9)   ;;  %1016 = vmatprep.subr.bf16.mxu1 (!%p191_p9), %v1896_v0  ;;  %v1901_v3 = vld [vmem:[%s2824_s1 + $0x200] ss:$8 sps:$4 sm:$0xff] (!%p191_p9)   ;;  %p218_p10 = scmp.lt.s32.totalorder (!%p191_p9), %s2225_s22, 1 }
   0xf   : > { %1102 = vmatprep.subr.bf16.mxu0 (!%p191_p9), %v1898_v1  ;;  %1017 = vmatpush1.bf16.msra.mxu1 (!%p191_p9), %v1900_v2  ;;  %v1904_v5 = vld [vmem:[%s2824_s1 + $0x214] ss:$8 sps:$4 sm:$0xff] (!%p191_p9)   ;;  %v1906_v6 = vld [vmem:[%s2824_s1 + $0x10] ss:$8 sps:$4 sm:$0xff] (!%p191_p9)   ;;  %v1908_v8 = vld [vmem:[%s2824_s1 + $0x24] ss:$8 sps:$4 sm:$0xff] (!%p191_p9)  }
  0x10   : > { %1103 = vmatpush1.bf16.msra.mxu0 (!%p191_p9), %v1901_v3  ;;  %1018 = vmatprep.subr.bf16.mxu1 (!%p191_p9), %v1902_v4  ;;  %v1907_v7 = vld [vmem:[%s2824_s1 + $0x210] ss:$8 sps:$4 sm:$0xff] (!%p191_p9)   ;;  %v1910_v9 = vld [vmem:[%s2824_s1 + $0x224] ss:$8 sps:$4 sm:$0xff] (!%p191_p9)   ;;  %v1912_v10 = vld [vmem:[%s2824_s1 + $0x20] ss:$8 sps:$4 sm:$0xff] (!%p191_p9)  }
  0x11   : > { %1104 = vmatprep.subr.bf16.mxu0 (!%p191_p9), %v1904_v5  ;;  %v1913_v11 = vld [vmem:[%s2824_s1 + $0x220] ss:$8 sps:$4 sm:$0xff] (!%p191_p9)   ;;  %v1914_v12 = vld [vmem:[%s2824_s1 + $0x34] ss:$8 sps:$4 sm:$0xff] (!%p191_p9)   ;;  %v1918_v14 = vld [vmem:[%s2824_s1 + $0x30] ss:$8 sps:$4 sm:$0xff] (!%p191_p9)  }
  0x12   : > { %v1916_v13 = vld [vmem:[%s2824_s1 + $0x234] ss:$8 sps:$4 sm:$0xff] (!%p191_p9)   ;;  %v1919_v15 = vld [vmem:[%s2824_s1 + $0x230] ss:$8 sps:$4 sm:$0xff] (!%p191_p9)   ;;  %v1920_v16 = vld [vmem:[%s2824_s1 + $0x44] ss:$8 sps:$4 sm:$0xff] (!%p191_p9)  }
  0x13   : > { %1019 = vmatpush1.bf16.msra.mxu1 (!%p191_p9), %v1906_v6  ;;  %v1922_v17 = vld [vmem:[%s2824_s1 + $0x244] ss:$8 sps:$4 sm:$0xff] (!%p191_p9)   ;;  %v1924_v18 = vld [vmem:[%s2824_s1 + $0x40] ss:$8 sps:$4 sm:$0xff] (!%p191_p9)   ;;  %v1926_v20 = vld [vmem:[%s2824_s1 + $0x54] ss:$8 sps:$4 sm:$0xff] (!%p191_p9)  }
  0x14   : > { %1105 = vmatpush1.bf16.msra.mxu0 (!%p191_p9), %v1907_v7  ;;  %1020 = vmatprep.subr.bf16.mxu1 (!%p191_p9), %v1908_v8  ;;  %v1925_v19 = vld [vmem:[%s2824_s1 + $0x240] ss:$8 sps:$4 sm:$0xff] (!%p191_p9)   ;;  %v1928_v21 = vld [vmem:[%s2824_s1 + $0x254] ss:$8 sps:$4 sm:$0xff] (!%p191_p9)   ;;  %v1930_v22 = vld [vmem:[%s2824_s1 + $0x50] ss:$8 sps:$4 sm:$0xff] (!%p191_p9)  }
  0x15   : > { %1106 = vmatprep.subr.bf16.mxu0 %v1910_v9  ;;  %v1931_v23 = vld [vmem:[%s2824_s1 + $0x250] ss:$8 sps:$4 sm:$0xff]   ;;  %v1932_v24 = vld [vmem:[%s2824_s1 + $0x64] ss:$8 sps:$4 sm:$0xff]   ;;  %v1936_v26 = vld [vmem:[%s2824_s1 + $0x60] ss:$8 sps:$4 sm:$0xff]  }
  0x16   : > { %v1934_v25 = vld [vmem:[%s2824_s1 + $0x264] ss:$8 sps:$4 sm:$0xff]   ;;  %v1937_v27 = vld [vmem:[%s2824_s1 + $0x260] ss:$8 sps:$4 sm:$0xff]   ;;  %v1938_v28 = vld [vmem:[%s2824_s1 + $0x74] ss:$8 sps:$4 sm:$0xff]  }
  0x17   : > { %1021 = vmatpush1.bf16.msra.mxu1 %v1912_v10  ;;  %v1940_v29 = vld [vmem:[%s2824_s1 + $0x274] ss:$8 sps:$4 sm:$0xff]   ;;  %v1942_v30 = vld [vmem:[%s2824_s1 + $0x70] ss:$8 sps:$4 sm:$0xff]   ;;  %v1944_v32 = vld [vmem:[%s2824_s1 + $0x84] ss:$8 sps:$4 sm:$0xff]  }
  0x18   : > { %1107 = vmatpush1.bf16.msra.mxu0 %v1913_v11  ;;  %1022 = vmatprep.subr.bf16.mxu1 %v1914_v12  ;;  %v1943_v31 = vld [vmem:[%s2824_s1 + $0x270] ss:$8 sps:$4 sm:$0xff]   ;;  %v1946_v33 = vld [vmem:[%s2824_s1 + $0x284] ss:$8 sps:$4 sm:$0xff]   ;;  %v1948_v34 = vld [vmem:[%s2824_s1 + $0x80] ss:$8 sps:$4 sm:$0xff]  }
  0x19   : > { %1108 = vmatprep.subr.bf16.mxu0 %v1916_v13  ;;  %v1949_v35 = vld [vmem:[%s2824_s1 + $0x280] ss:$8 sps:$4 sm:$0xff]   ;;  %v1950_v36 = vld [vmem:[%s2824_s1 + $0x94] ss:$8 sps:$4 sm:$0xff]   ;;  %s219_s15 = scalar_select %p218_p10, %s2225_s22, 1  ;;  %vm1189_vm0 = vcmask 785408  }
  0x1a   : > { %v1952_v37 = vld [vmem:[%s2824_s1 + $0x294] ss:$8 sps:$4 sm:$0xff]   ;;  %v1954_v38 = vld [vmem:[%s2824_s1 + $0x90] ss:$8 sps:$4 sm:$0xff]   ;;  %v1956_v40 = vld [vmem:[%s2824_s1 + $0xa4] ss:$8 sps:$4 sm:$0xff]  }
  0x1b   : > { %1023 = vmatpush1.bf16.msra.mxu1 %v1918_v14  ;;  %v1955_v39 = vld [vmem:[%s2824_s1 + $0x290] ss:$8 sps:$4 sm:$0xff]   ;;  %s1811_s8 = sshll.u32 %s219_s15, 7  ;;  %v1958_v41 = vld [vmem:[%s2824_s1 + $0x2a4] ss:$8 sps:$4 sm:$0xff]   ;;  %vm1227_vm1 = vcmask 1045504  }
  0x1c   : > { %1109 = vmatpush1.bf16.msra.mxu0 %v1919_v15  ;;  %1024 = vmatprep.subr.bf16.mxu1 %v1920_v16  ;;  %v1960_v42 = vld [vmem:[%s2824_s1 + $0xa0] ss:$8 sps:$4 sm:$0xff]   ;;  %s2389_s23 = scalar_lea.vmem %s2823_s0, %s1811_s8  ;;  %v1962_v44 = vld [vmem:[%s2824_s1 + $0xb4] ss:$8 sps:$4 sm:$0xff]   ;;  %v1966_v46 = vld [vmem:[%s2824_s1 + $0xb0] ss:$8 sps:$4 sm:$0xff]  }
  0x1d   : > { %1110 = vmatprep.subr.bf16.mxu0 %v1922_v17  ;;  %v1961_v43 = vld [vmem:[%s2824_s1 + $0x2a0] ss:$8 sps:$4 sm:$0xff]   ;;  %v1964_v45 = vld [vmem:[%s2824_s1 + $0x2b4] ss:$8 sps:$4 sm:$0xff]   ;;  %v1967_v47 = vld [vmem:[%s2824_s1 + $0x2b0] ss:$8 sps:$4 sm:$0xff]  }
  0x1e   : > { %v225_v48 = vld [vmem:[%s2389_s23 + $0x8] sm:$0xff]  ;;  %v1974_v58 = vld [vmem:[%s2824_s1 + $0xd4] ss:$8 sps:$4 sm:$0xff]   ;;  %v1978_v60 = vld [vmem:[%s2824_s1 + $0xd0] ss:$8 sps:$4 sm:$0xff]   ;;  %vm1205_vm2 = vcmask 1046528  }
  0x1f   : > { %1025 = vmatpush1.bf16.msra.mxu1 %v1924_v18  ;;  %v233_v49 = vld [vmem:[%s2389_s23 + $0x48] sm:$0xff]  ;;  %v1976_v59 = vld [vmem:[%s2824_s1 + $0x2d4] ss:$8 sps:$4 sm:$0xff]   ;;  %v1979_v61 = vld [vmem:[%s2824_s1 + $0x2d0] ss:$8 sps:$4 sm:$0xff]   ;;  %s2168_s30 = smov 64  }
  0x20   : > { %1111 = vmatpush1.bf16.msra.mxu0 %v1925_v19  ;;  %1026 = vmatprep.subr.bf16.mxu1 %v1926_v20  ;;  %v1968_v50 = vld [vmem:[%s2824_s1 + $0xc4] ss:$8 sps:$4 sm:$0xff]   ;;  %v241_v52 = vpack.c.bf16 %v233_v49, %v225_v48  ;;  %v1972_v56 = vld [vmem:[%s2824_s1 + $0xc0] ss:$8 sps:$4 sm:$0xff]   ;;  %v1986_v2 = vld [vmem:[%s2824_s1 + $0xf4] ss:$8 sps:$4 sm:$0xff]  }
  0x21   : > { %1112 = vmatprep.subr.bf16.mxu0 %v1928_v21  ;;  %v1970_v51 = vld [vmem:[%s2824_s1 + $0x2c4] ss:$8 sps:$4 sm:$0xff]   ;;  %v1973_v57 = vld [vmem:[%s2824_s1 + $0x2c0] ss:$8 sps:$4 sm:$0xff]   ;;  %v1988_v3 = vld [vmem:[%s2824_s1 + $0x2f4] ss:$8 sps:$4 sm:$0xff]  }
  0x22   : > { %v229_v53 = vld [vmem:[%s2389_s23 + $0x28] sm:$0xff]  ;;  %1048 = vmatprep.mubr.bf16.mxu1 %v241_v52  ;;  %v1990_v4 = vld [vmem:[%s2824_s1 + $0xf0] ss:$8 sps:$4 sm:$0xff]   ;;  %v224_v6 = vld [vmem:[%s2389_s23] sm:$0xff]  ;;  %s2169_s6 = smov 96   ;;  %vm1338_vm3 = vcmask 261120  }
  0x23   : > { %1027 = vmatpush1.bf16.msra.mxu1 %v1930_v22  ;;  %v237_v54 = vld [vmem:[%s2389_s23 + $0x68] sm:$0xff]  ;;  %v1991_v5 = vld [vmem:[%s2824_s1 + $0x2f0] ss:$8 sps:$4 sm:$0xff]   ;;  %v232_v8 = vld [vmem:[%s2389_s23 + $0x40] sm:$0xff]  ;;  %vm1247_vm4 = vcmask 1044480   ;;  %vm1285_vm5 = vcmask 1042432  }
  0x24   : > { %1113 = vmatpush1.bf16.msra.mxu0 %v1931_v23  ;;  %1028 = vmatprep.subr.bf16.mxu1 %v1932_v24  ;;  %v245_v55 = vpack.c.bf16 %v237_v54, %v229_v53  ;;  %v1980_v62 = vld [vmem:[%s2824_s1 + $0xe4] ss:$8 sps:$4 sm:$0xff]   ;;  %v1984_v0 = vld [vmem:[%s2824_s1 + $0xe0] ss:$8 sps:$4 sm:$0xff]   ;;  %v240_v14 = vpack.c.bf16 %v232_v8, %v224_v6  ;;  %v2000_v16 = vld [vmem:[%s2824_s1 + $0x114] ss:$8 sps:$4 sm:$0xff]  }
  0x25   : > { %1114 = vmatprep.subr.bf16.mxu0 %v1934_v25  ;;  %v1982_v63 = vld [vmem:[%s2824_s1 + $0x2e4] ss:$8 sps:$4 sm:$0xff]   ;;  %v1985_v1 = vld [vmem:[%s2824_s1 + $0x2e0] ss:$8 sps:$4 sm:$0xff]   ;;  %v2003_v17 = vld [vmem:[%s2824_s1 + $0x314] ss:$8 sps:$4 sm:$0xff]  }
  0x26   : > { %1134 = vmatprep.mubr.bf16.mxu0 %v245_v55  ;;  %v1994_v7 = vld [vmem:[%s2824_s1 + $0x104] ss:$8 sps:$4 sm:$0xff]   ;;  %v1992_v12 = vld [vmem:[%s2824_s1 + $0x100] ss:$8 sps:$4 sm:$0xff]   ;;  %v1998_v18 = vld [vmem:[%s2824_s1 + $0x110] ss:$8 sps:$4 sm:$0xff]  }
  0x27   : > { %1029 = vmatpush1.bf16.msra.mxu1 %v1936_v26  ;;  %v228_v9 = vld [vmem:[%s2389_s23 + $0x20] sm:$0xff]  ;;  %v2001_v19 = vld [vmem:[%s2824_s1 + $0x310] ss:$8 sps:$4 sm:$0xff]   ;;  %v2012_v24 = vld [vmem:[%s2824_s1 + $0x134] ss:$8 sps:$4 sm:$0xff]   ;;  %vm1307_vm6 = vcmask 1041408  }
  0x28   : > { %1115 = vmatpush1.bf16.msra.mxu0 %v1937_v27  ;;  %1030 = vmatprep.subr.bf16.mxu1 %v1938_v28  ;;  %v236_v10 = vld [vmem:[%s2389_s23 + $0x60] sm:$0xff]  ;;  %v2015_v25 = vld [vmem:[%s2824_s1 + $0x334] ss:$8 sps:$4 sm:$0xff]   ;;  %v2010_v26 = vld [vmem:[%s2824_s1 + $0x130] ss:$8 sps:$4 sm:$0xff]   ;;  %vm1341_vm7 = vcmask 261125  }
  0x29   : > { %1116 = vmatprep.subr.bf16.mxu0 %v1940_v29  ;;  %v1997_v11 = vld [vmem:[%s2824_s1 + $0x304] ss:$8 sps:$4 sm:$0xff]   ;;  %v1995_v13 = vld [vmem:[%s2824_s1 + $0x300] ss:$8 sps:$4 sm:$0xff]   ;;  %v244_v15 = vpack.c.bf16 %v236_v10, %v228_v9  ;;  %v2013_v27 = vld [vmem:[%s2824_s1 + $0x330] ss:$8 sps:$4 sm:$0xff]  }
  0x2a   : > { %v2006_v20 = vld [vmem:[%s2824_s1 + $0x124] ss:$8 sps:$4 sm:$0xff]   ;;  %v2004_v22 = vld [vmem:[%s2824_s1 + $0x120] ss:$8 sps:$4 sm:$0xff]   ;;  %v2037_v48 = vld [vmem:[%s2824_s1 + $0x370] ss:$8 sps:$4 sm:$0xff]  }
  0x2b   : > { %1031 = vmatpush1.bf16.msra.mxu1 %v1942_v30  ;;  %v2009_v21 = vld [vmem:[%s2824_s1 + $0x324] ss:$8 sps:$4 sm:$0xff]   ;;  %v2007_v23 = vld [vmem:[%s2824_s1 + $0x320] ss:$8 sps:$4 sm:$0xff]   ;;  %v2048_v54 = vld [vmem:[%s2824_s1 + $0x194] ss:$8 sps:$4 sm:$0xff]  }
  0x2c   : > { %1117 = vmatpush1.bf16.msra.mxu0 %v1943_v31  ;;  %1032 = vmatprep.subr.bf16.mxu1 %v1944_v32  ;;  %v2018_v28 = vld [vmem:[%s2824_s1 + $0x144] ss:$8 sps:$4 sm:$0xff]   ;;  %v2016_v30 = vld [vmem:[%s2824_s1 + $0x140] ss:$8 sps:$4 sm:$0xff]   ;;  %v2024_v32 = vld [vmem:[%s2824_s1 + $0x154] ss:$8 sps:$4 sm:$0xff]  }
  0x2d   : > { %1118 = vmatprep.subr.bf16.mxu0 %v1946_v33  ;;  %v2021_v29 = vld [vmem:[%s2824_s1 + $0x344] ss:$8 sps:$4 sm:$0xff]   ;;  %v2019_v31 = vld [vmem:[%s2824_s1 + $0x340] ss:$8 sps:$4 sm:$0xff]   ;;  %v2027_v33 = vld [vmem:[%s2824_s1 + $0x354] ss:$8 sps:$4 sm:$0xff]  }
  0x2e   : > { %v2040_v52 = vld [vmem:[%s2824_s1 + $0x180] ss:$8 sps:$4 sm:$0xff]   ;;  %v2051_v55 = vld [vmem:[%s2824_s1 + $0x394] ss:$8 sps:$4 sm:$0xff]   ;;  %v2070_v8 = vld [vmem:[%s2824_s1 + $0x1d0] ss:$8 sps:$4 sm:$0xff]  }
  0x2f   : > { %1033 = vmatpush1.bf16.msra.mxu1 %v1948_v34  ;;  %v2022_v34 = vld [vmem:[%s2824_s1 + $0x150] ss:$8 sps:$4 sm:$0xff]   ;;  %v2043_v53 = vld [vmem:[%s2824_s1 + $0x380] ss:$8 sps:$4 sm:$0xff]   ;;  %v2072_v6 = vld [vmem:[%s2824_s1 + $0x1d4] ss:$8 sps:$4 sm:$0xff]  }
  0x30   : > { %1119 = vmatpush1.bf16.msra.mxu0 %v1949_v35  ;;  %1034 = vmatprep.subr.bf16.mxu1 %v1950_v36  ;;  %v2025_v35 = vld [vmem:[%s2824_s1 + $0x350] ss:$8 sps:$4 sm:$0xff]   ;;  %v2030_v36 = vld [vmem:[%s2824_s1 + $0x164] ss:$8 sps:$4 sm:$0xff]   ;;  %vm1269_vm8 = vcmask 1043456   ;;  %vm1344_vm9 = vcmask 258048  }
  0x31   : > { %1120 = vmatprep.subr.bf16.mxu0 %v1952_v37  ;;  %v2033_v37 = vld [vmem:[%s2824_s1 + $0x364] ss:$8 sps:$4 sm:$0xff]   ;;  %v2073_v9 = vld [vmem:[%s2824_s1 + $0x3d0] ss:$8 sps:$4 sm:$0xff]   ;;  %vm1402_vm10 = vcmask 523264   ;;  %s1812_s14 = sshll.u32 %s2225_s22, 8 }
  0x32   : > { %v2078_v10 = vld [vmem:[%s2824_s1 + $0x1e4] ss:$8 sps:$4 sm:$0xff]   ;;  %s2780_s15 = scalar_lea.hbm %s2828_s5, %s1812_s14  ;;  %s2171_s26 = smov [#allocation4]  }
  0x33   : > { %1035 = vmatpush1.bf16.msra.mxu1 %v1954_v38  ;;  %v2028_v38 = vld [vmem:[%s2824_s1 + $0x160] ss:$8 sps:$4 sm:$0xff]   ;;  %s2106_s7 = sshll.u32 %s2171_s26, 4  ;;  %s2107_s7 = int_to_ptr.vmem [resolvable:$false] %s2106_s7 }
  0x34   : > { %1121 = vmatpush1.bf16.msra.mxu0 %v1955_v39  ;;  %1036 = vmatprep.subr.bf16.mxu1 %v1956_v40  ;;  %v2031_v39 = vld [vmem:[%s2824_s1 + $0x360] ss:$8 sps:$4 sm:$0xff]   ;;  %v227_v40 = vld [vmem:[%s2389_s23 + $0x18] sm:$0xff]  ;;  %s2108_s8 = scalar_lea.vmem %s2107_s7, 512 }
  0x35   : > { %1122 = vmatprep.subr.bf16.mxu0 %v1958_v41  ;;  %v235_v41 = vld [vmem:[%s2389_s23 + $0x58] sm:$0xff] }
  0x37   : > { %1037 = vmatpush1.bf16.msra.mxu1 %v1960_v42  ;;  %v231_v42 = vld [vmem:[%s2389_s23 + $0x38] sm:$0xff] }
  0x38   : > { %1123 = vmatpush1.bf16.msra.mxu0 %v1961_v43  ;;  %1038 = vmatprep.subr.bf16.mxu1 %v1962_v44  ;;  %v2036_v43 = vld [vmem:[%s2824_s1 + $0x174] ss:$8 sps:$4 sm:$0xff]  }
  0x39   : > { %1124 = vmatprep.subr.bf16.mxu0 %v1964_v45  ;;  %v2039_v44 = vld [vmem:[%s2824_s1 + $0x374] ss:$8 sps:$4 sm:$0xff]   ;;  %v243_v45 = vpack.c.bf16 %v235_v41, %v227_v40 }
  0x3b   : > { %1039 = vmatpush1.bf16.msra.mxu1 %v1966_v46  ;;  %v239_v46 = vld [vmem:[%s2389_s23 + $0x78] sm:$0xff] }
  0x3c   : > { %1125 = vmatpush1.bf16.msra.mxu0 %v1967_v47  ;;  %1040 = vmatprep.subr.bf16.mxu1 %v1968_v50  ;;  %v2034_v47 = vld [vmem:[%s2824_s1 + $0x170] ss:$8 sps:$4 sm:$0xff]   ;;  %v247_v49 = vpack.c.bf16 %v239_v46, %v231_v42  ;;  %v2042_v50 = vld [vmem:[%s2824_s1 + $0x184] ss:$8 sps:$4 sm:$0xff]  }
  0x3d   : > { %1126 = vmatprep.subr.bf16.mxu0 %v1970_v51  ;;  %v2045_v51 = vld [vmem:[%s2824_s1 + $0x384] ss:$8 sps:$4 sm:$0xff]  }
  0x3f   : > { %1041 = vmatpush1.bf16.msra.mxu1 %v1972_v56  ;;  %v2046_v56 = vld [vmem:[%s2824_s1 + $0x190] ss:$8 sps:$4 sm:$0xff]  }
  0x40   : > { %1127 = vmatpush1.bf16.msra.mxu0 %v1973_v57  ;;  %1042 = vmatprep.subr.bf16.mxu1 %v1974_v58  ;;  %v2049_v57 = vld [vmem:[%s2824_s1 + $0x390] ss:$8 sps:$4 sm:$0xff]   ;;  %v2054_v58 = vld [vmem:[%s2824_s1 + $0x1a4] ss:$8 sps:$4 sm:$0xff]  }
  0x41   : > { %1128 = vmatprep.subr.bf16.mxu0 %v1976_v59  ;;  %v2057_v59 = vld [vmem:[%s2824_s1 + $0x3a4] ss:$8 sps:$4 sm:$0xff]  }
  0x43   : > { %1043 = vmatpush1.bf16.msra.mxu1 %v1978_v60  ;;  %v2052_v60 = vld [vmem:[%s2824_s1 + $0x1a0] ss:$8 sps:$4 sm:$0xff]  }
  0x44   : > { %1129 = vmatpush1.bf16.msra.mxu0 %v1979_v61  ;;  %1044 = vmatprep.subr.bf16.mxu1 %v1980_v62  ;;  %v2055_v61 = vld [vmem:[%s2824_s1 + $0x3a0] ss:$8 sps:$4 sm:$0xff]   ;;  %v2060_v62 = vld [vmem:[%s2824_s1 + $0x1b4] ss:$8 sps:$4 sm:$0xff]  }
  0x45   : > { %1130 = vmatprep.subr.bf16.mxu0 %v1982_v63  ;;  %v2063_v63 = vld [vmem:[%s2824_s1 + $0x3b4] ss:$8 sps:$4 sm:$0xff]  }
  0x47   : > { %1045 = vmatpush1.bf16.msra.mxu1 %v1984_v0  ;;  %v2058_v0 = vld [vmem:[%s2824_s1 + $0x1b0] ss:$8 sps:$4 sm:$0xff]  }
  0x48   : > { %1131 = vmatpush1.bf16.msra.mxu0 %v1985_v1  ;;  %1046 = vmatprep.subr.bf16.mxu1 %v1986_v2  ;;  %v2061_v1 = vld [vmem:[%s2824_s1 + $0x3b0] ss:$8 sps:$4 sm:$0xff]   ;;  %v2066_v2 = vld [vmem:[%s2824_s1 + $0x1c4] ss:$8 sps:$4 sm:$0xff]  }
  0x49   : > { %1132 = vmatprep.subr.bf16.mxu0 %v1988_v3  ;;  %v2069_v3 = vld [vmem:[%s2824_s1 + $0x3c4] ss:$8 sps:$4 sm:$0xff]  }
  0x4b   : > { %1047 = vmatpush1.bf16.msra.mxu1 %v1990_v4  ;;  %v2064_v4 = vld [vmem:[%s2824_s1 + $0x1c0] ss:$8 sps:$4 sm:$0xff]  }
  0x4c   : > { %1133 = vmatpush1.bf16.msra.mxu0 %v1991_v5  ;;  %1059 = vmatprep.subr.bf16.mxu1 %v1994_v7  ;;  %v2067_v5 = vld [vmem:[%s2824_s1 + $0x3c0] ss:$8 sps:$4 sm:$0xff]   ;;  %v2075_v7 = vld [vmem:[%s2824_s1 + $0x3d4] ss:$8 sps:$4 sm:$0xff]  }
  0x4d   : > { %1145 = vmatprep.subr.bf16.mxu0 %v1997_v11  ;;  %v2081_v11 = vld [vmem:[%s2824_s1 + $0x3e4] ss:$8 sps:$4 sm:$0xff]  }
  0x4e   : > { %1049 = vmatmul.mubr.bf16.vlgmr.msra.gmra.mrb[0].mxu1 %v240_v14  ;;  %v2084_v14 = vld [vmem:[%s2824_s1 + $0x1f4] ss:$8 sps:$4 sm:$0xff]  }
  0x4f   : > { %1135 = vmatmul.mubr.bf16.vlgmr.msra.gmra.mrb[0].mxu0 %v244_v15  ;;  %1060 = vmatpush1.bf16.msra.mxu1 %v1992_v12  ;;  %v2076_v12 = vld [vmem:[%s2824_s1 + $0x1e0] ss:$8 sps:$4 sm:$0xff]   ;;  %v2087_v15 = vld [vmem:[%s2824_s1 + $0x3f4] ss:$8 sps:$4 sm:$0xff]  }
  0x50   : > { %1146 = vmatpush1.bf16.msra.mxu0 %v1995_v13  ;;  %1061 = vmatprep.subr.bf16.mxu1 %v2000_v16  ;;  %v2079_v13 = vld [vmem:[%s2824_s1 + $0x3e0] ss:$8 sps:$4 sm:$0xff]   ;;  %v2082_v16 = vld [vmem:[%s2824_s1 + $0x1f0] ss:$8 sps:$4 sm:$0xff]  }
  0x51   : > { %1147 = vmatprep.subr.bf16.mxu0 %v2003_v17  ;;  %1091 = vmatprep.mubr.bf16.mxu1 %v243_v45  ;;  %v2085_v17 = vld [vmem:[%s2824_s1 + $0x3f0] ss:$8 sps:$4 sm:$0xff]  }
  0x52   : > { %1177 = vmatprep.mubr.bf16.mxu0 %v247_v49 }
  0x53   : > { %1062 = vmatpush1.bf16.msra.mxu1 %v1998_v18  ;;  %v226_v18 = vld [vmem:[%s2389_s23 + $0x10] sm:$0xff] }
  0x54   : > { %1148 = vmatpush1.bf16.msra.mxu0 %v2001_v19  ;;  %1063 = vmatprep.subr.bf16.mxu1 %v2006_v20  ;;  %v234_v19 = vld [vmem:[%s2389_s23 + $0x50] sm:$0xff] }
  0x55   : > { %1149 = vmatprep.subr.bf16.mxu0 %v2009_v21  ;;  %v230_v20 = vld [vmem:[%s2389_s23 + $0x30] sm:$0xff] }
  0x56   : > { %v238_v21 = vld [vmem:[%s2389_s23 + $0x70] sm:$0xff]  ;;  %s2167_s23 = smov 32  }
  0x57   : > { %1064 = vmatpush1.bf16.msra.mxu1 %v2004_v22  ;;  %v242_v22 = vpack.c.bf16 %v234_v19, %v226_v18 }
  0x58   : > { %1150 = vmatpush1.bf16.msra.mxu0 %v2007_v23  ;;  %1065 = vmatprep.subr.bf16.mxu1 %v2012_v24  ;;  %v246_v23 = vpack.c.bf16 %v238_v21, %v230_v20  ;;  %v2166_v24 = vmov 0.0  }
  0x59   : > { %1151 = vmatprep.subr.bf16.mxu0 %v2015_v25  ;;  %1188 = vst [vmem:[#allocation2] sm:$0xff] %v2166_v24  ;;  %1192 = vst.msk [vmem:[#allocation2 + $0x38] sm:$0xff] %vm1189_vm0, %v2166_v24 }
  0x5a   : > { %1339 = vst.msk [vmem:[#allocation3] sm:$0xff] %vm1338_vm3, %v2166_v24  ;;  %1340 = vst.msk [vmem:[#allocation3 + $0x18] sm:$0xff] %vm1338_vm3, %v2166_v24 }
  0x5b   : > { %1066 = vmatpush1.bf16.msra.mxu1 %v2010_v26 }
  0x5c   : > { %1152 = vmatpush1.bf16.msra.mxu0 %v2013_v27  ;;  %1067 = vmatprep.subr.bf16.mxu1 %v2018_v28 }
  0x5d   : > { %1153 = vmatprep.subr.bf16.mxu0 %v2021_v29 }
  0x5f   : > { %1068 = vmatpush1.bf16.msra.mxu1 %v2016_v30 }
  0x60   : > { %1154 = vmatpush1.bf16.msra.mxu0 %v2019_v31  ;;  %1069 = vmatprep.subr.bf16.mxu1 %v2024_v32  ;;  %v1223_v25 = vld [vmem:[#allocation2] sm:$0x80] }
  0x61   : > { %1155 = vmatprep.subr.bf16.mxu0 %v2027_v33  ;;  %v1228_v31 = vrot.slane %v1223_v25, 2  ;;  %v1200_v32 = vld [vmem:[#allocation2] sm:$0xc0] }
  0x62   : > { %v1206_v42 = vrot.slane %v1200_v32, 1  ;;  %v1197_v18 = vld [vmem:[#allocation2] sm:$0xe0] }
  0x63   : > { %1070 = vmatpush1.bf16.msra.mxu1 %v2022_v34 }
  0x64   : > { %1156 = vmatpush1.bf16.msra.mxu0 %v2025_v35  ;;  %1071 = vmatprep.subr.bf16.mxu1 %v2030_v36 }
  0x65   : > { %1157 = vmatprep.subr.bf16.mxu0 %v2033_v37 }
  0x67   : > { %1072 = vmatpush1.bf16.msra.mxu1 %v2028_v38 }
  0x68   : > { %1158 = vmatpush1.bf16.msra.mxu0 %v2031_v39  ;;  %1073 = vmatprep.subr.bf16.mxu1 %v2036_v43 }
  0x69   : > { %1159 = vmatprep.subr.bf16.mxu0 %v2039_v44 }
  0x6b   : > { %1074 = vmatpush1.bf16.msra.mxu1 %v2034_v47 }
  0x6c   : > { %1160 = vmatpush1.bf16.msra.mxu0 %v2037_v48  ;;  %1075 = vmatprep.subr.bf16.mxu1 %v2042_v50 }
  0x6d   : > { %1161 = vmatprep.subr.bf16.mxu0 %v2045_v51 }
  0x6f   : > { %1076 = vmatpush1.bf16.msra.mxu1 %v2040_v52 }
  0x70   : > { %1162 = vmatpush1.bf16.msra.mxu0 %v2043_v53  ;;  %1077 = vmatprep.subr.bf16.mxu1 %v2048_v54 }
  0x71   : > { %1163 = vmatprep.subr.bf16.mxu0 %v2051_v55 }
  0x73   : > { %1078 = vmatpush1.bf16.msra.mxu1 %v2046_v56 }
  0x74   : > { %1164 = vmatpush1.bf16.msra.mxu0 %v2049_v57  ;;  %1079 = vmatprep.subr.bf16.mxu1 %v2054_v58  ;;  %v1282_v57 = vld [vmem:[#allocation2 + $0x38] sm:$0x3] }
  0x75   : > { %1165 = vmatprep.subr.bf16.mxu0 %v2057_v59 }
  0x77   : > { %1080 = vmatpush1.bf16.msra.mxu1 %v2052_v60 }
  0x78   : > { %1166 = vmatpush1.bf16.msra.mxu0 %v2055_v61  ;;  %1081 = vmatprep.subr.bf16.mxu1 %v2060_v62  ;;  %v1289_v61 = vrot.slane %v1282_v57, 5  ;;  %v1304_v62 = vld [vmem:[#allocation2 + $0x38] sm:$0x7] }
  0x79   : > { %1167 = vmatprep.subr.bf16.mxu0 %v2063_v63 }
  0x7b   : > { %1082 = vmatpush1.bf16.msra.mxu1 %v2058_v0 }
  0x7c   : > { %1168 = vmatpush1.bf16.msra.mxu0 %v2061_v1  ;;  %1083 = vmatprep.subr.bf16.mxu1 %v2066_v2  ;;  %v1311_v2 = vrot.slane %v1304_v62, 6 }
  0x7d   : > { %1169 = vmatprep.subr.bf16.mxu0 %v2069_v3 }
  0x7f   : > { %1084 = vmatpush1.bf16.msra.mxu1 %v2064_v4 }
  0x80   : > { %1170 = vmatpush1.bf16.msra.mxu0 %v2067_v5  ;;  %1085 = vmatprep.subr.bf16.mxu1 %v2072_v6  ;;  %v2088_v5 = vld [vmem:[%s2826_s3] sm:$0xff]   ;;  %v2170_v6 = vmov 0  }
  0x81   : > { %1171 = vmatprep.subr.bf16.mxu0 %v2075_v7  ;;  %v2089_v7 = vld [vmem:[%s2826_s3 + $0x8] sm:$0xff]  }
  0x83   : > { %1086 = vmatpush1.bf16.msra.mxu1 %v2070_v8  ;;  %v2090_v8 = vld [vmem:[%s2826_s3 + $0x10] sm:$0xff]  }
  0x84   : > { %1172 = vmatpush1.bf16.msra.mxu0 %v2073_v9  ;;  %1087 = vmatprep.subr.bf16.mxu1 %v2078_v10  ;;  %v2091_v9 = vld [vmem:[%s2826_s3 + $0x18] sm:$0xff]   ;;  %v2092_v10 = vld [vmem:[%s2826_s3 + $0x20] sm:$0xff]  }
  0x85   : > { %1173 = vmatprep.subr.bf16.mxu0 %v2081_v11  ;;  %v2093_v11 = vld [vmem:[%s2826_s3 + $0x28] sm:$0xff]  }
  0x87   : > { %1088 = vmatpush1.bf16.msra.mxu1 %v2076_v12  ;;  %v2094_v12 = vld [vmem:[%s2826_s3 + $0x30] sm:$0xff]  }
  0x88   : > { %1174 = vmatpush1.bf16.msra.mxu0 %v2079_v13  ;;  %1089 = vmatprep.subr.bf16.mxu1 %v2084_v14  ;;  %v2095_v13 = vld [vmem:[%s2826_s3 + $0x38] sm:$0xff]   ;;  %v2096_v14 = vld [vmem:[%s2826_s3 + $0x40] sm:$0xff]  }
  0x89   : > { %1175 = vmatprep.subr.bf16.mxu0 %v2087_v15  ;;  %v2097_v15 = vld [vmem:[%s2826_s3 + $0x48] sm:$0xff]  }
  0x8b   : > { %1090 = vmatpush1.bf16.msra.mxu1 %v2082_v16  ;;  %v2098_v16 = vld [vmem:[%s2826_s3 + $0x50] sm:$0xff]  }
  0x8c   : > { %1176 = vmatpush1.bf16.msra.mxu0 %v2085_v17  ;;  %1535 = vmatprep.subr.bf16.mxu1 %v2170_v6 }
  0x8e   : > { %1092 = vmatmul.mubr.bf16.vlgmr.msra.gmra.mrb[0].mxu1 %v242_v22 }
  0x8f   : > { %1178 = vmatmul.mubr.bf16.vlgmr.msra.gmra.mrb[0].mxu0 %v246_v23  ;;  %1536 = vmatpush1.bf16.msra.mxu1 %v2088_v5 }
  0x90   : > { %1537 = vmatprep.subr.bf16.mxu1 %v2170_v6 }
  0x93   : > { %1538 = vmatpush1.bf16.msra.mxu1 %v2089_v7 }
  0x94   : > { %1539 = vmatprep.subr.bf16.mxu1 %v2170_v6 }
  0x97   : > { %1540 = vmatpush1.bf16.msra.mxu1 %v2090_v8 }
  0x98   : > { %1541 = vmatprep.subr.bf16.mxu1 %v2170_v6 }
  0x9b   : > { %1542 = vmatpush1.bf16.msra.mxu1 %v2091_v9 }
  0x9c   : > { %1543 = vmatprep.subr.bf16.mxu1 %v2170_v6 }
  0x9f   : > { %1544 = vmatpush1.bf16.msra.mxu1 %v2092_v10 }
  0xa0   : > { %1545 = vmatprep.subr.bf16.mxu1 %v2170_v6 }
  0xa3   : > { %1546 = vmatpush1.bf16.msra.mxu1 %v2093_v11 }
  0xa4   : > { %1547 = vmatprep.subr.bf16.mxu1 %v2170_v6 }
  0xa7   : > { %1548 = vmatpush1.bf16.msra.mxu1 %v2094_v12 }
  0xa8   : > { %1549 = vmatprep.subr.bf16.mxu1 %v2170_v6 }
  0xab   : > { %1550 = vmatpush1.bf16.msra.mxu1 %v2095_v13 }
  0xac   : > { %1551 = vmatprep.subr.bf16.mxu1 %v2170_v6 }
  0xaf   : > { %1552 = vmatpush1.bf16.msra.mxu1 %v2096_v14 }
  0xb0   : > { %1553 = vmatprep.subr.bf16.mxu1 %v2170_v6 }
  0xb3   : > { %1554 = vmatpush1.bf16.msra.mxu1 %v2097_v15  ;;  %v2101_v15 = vld [vmem:[%s2826_s3 + $0x68] sm:$0xff]  }
  0xb4   : > { %1555 = vmatprep.subr.bf16.mxu1 %v2170_v6 }
  0xb7   : > { %1556 = vmatpush1.bf16.msra.mxu1 %v2098_v16 }
  0xb8   : > { %1557 = vmatprep.subr.bf16.mxu1 %v2170_v6 }
 0x161   : > { %v1093_v26 = vpop.f32.mrb[0].mxu1 }
 0x162   : > { %v1179_v27 = vpop.f32.mrb[0].mxu0  ;;  %v1095_v29 = vpop.f32.mrb[1].mxu1 }
 0x163   : > { %v2660_v28 = vadd.f32 %v1179_v27, %v1093_v26  ;;  %v1181_v30 = vpop.f32.mrb[1].mxu0  ;;  %v1097_v34 = vpop.f32.mrb[2].mxu1 }
 0x164   : > { %v1814_v33 = vadd.f32 %v1181_v30, %v1095_v29  ;;  %v1183_v35 = vpop.f32.mrb[2].mxu0  ;;  %v1099_v37 = vpop.f32.mrb[3].mxu1 }
 0x165   : > { %v1815_v36 = vadd.f32 %v1183_v35, %v1097_v34  ;;  %v1185_v38 = vpop.f32.mrb[3].mxu0  ;;  %v1248_v39 = vrot.slane %v2660_v28, 3  ;;  %v1229_v40 = vrot.slane %v2660_v28, 2  ;;  %v1207_v43 = vrot.slane %v2660_v28, 1 }
 0x166   : > { %1194 = vst.msk [vmem:[#allocation2 + $0x18] sm:$0xff] %vm1189_vm0, %v1814_v33  ;;  %v1816_v41 = vadd.f32 %v1185_v38, %v1099_v37  ;;  %v1789_v33 = vld [vmem:[%s2825_s2] ss:$0 sm:$0xff] }
 0x167   : > { %1195 = vst [vmem:[#allocation2 + $0x20] sm:$0xff] %v1815_v36  ;;  %1251 = vrot.lane.b32.xlu0 %v1248_v39, %s2167_s23  ;;  %v1230_v44 = vsel %vm1227_vm1, %v1228_v31, %v1229_v40  ;;  %v1208_v45 = vsel %vm1205_vm2, %v1206_v42, %v1207_v43  ;;  %v1249_v52 = vrot.slane %v1815_v36, 3 }
 0x168   : > { %1196 = vst.msk [vmem:[#allocation2 + $0x28] sm:$0xff] %vm1189_vm0, %v1816_v41  ;;  %1233 = vrot.lane.b32.xlu1 %v1230_v44, %s2168_s30  ;;  %v1265_v41 = vld [vmem:[#allocation2 + $0x38] sm:$0x1] }
 0x169   : > { %v1250_v58 = vsel %vm1247_vm4, %v1248_v39, %v1249_v52 }
 0x16b   : > { %1211 = vrot.lane.b32.xlu0 %v1208_v45, %s2169_s6 }
 0x16d   : > { %v1281_v46 = vld [vmem:[#allocation2 + $0x18] sm:$0xfc] }
 0x16e   : > { %v1303_v47 = vld [vmem:[#allocation2 + $0x18] sm:$0xf8]  ;;  %v1286_v48 = vrot.slane %v1281_v46, 5  ;;  %v1201_v50 = vld [vmem:[#allocation2 + $0x20] sm:$0x3f]  ;;  %v1273_v46 = vrot.slane %v1265_v41, 4 }
 0x16f   : > { %v1308_v49 = vrot.slane %v1303_v47, 6  ;;  %v1209_v51 = vrot.slane %v1201_v50, 1  ;;  %v1224_v53 = vld [vmem:[#allocation2 + $0x20] sm:$0x7f]  ;;  %v2681_v56 = vld [vmem:[#allocation2 + $0x28] sm:$0xff] }
 0x170   : > { %1291 = vrot.lane.b32.xlu1 %v1286_v48, %s2169_s6  ;;  %v1231_v54 = vrot.slane %v1224_v53, 2  ;;  %v1287_v60 = vrot.slane %v2681_v56, 5  ;;  %v1309_v1 = vrot.slane %v2681_v56, 6  ;;  %v1263_v22 = vld [vmem:[#allocation2 + $0x18] sm:$0xfe]  ;;  %v1271_v47 = vrot.slane %v2681_v56, 4 }
 0x171   : > { %1313 = vrot.lane.b32.xlu0 %v1308_v49, %s2168_s30  ;;  %v1210_v55 = vsel %vm1205_vm2, %v1207_v43, %v1209_v51  ;;  %v1270_v26 = vrot.slane %v1263_v22, 4  ;;  %v1199_v35 = vld [vmem:[#allocation2 + $0x20] sm:$0x1f] }
 0x172   : > { %v1232_v59 = vsel %vm1227_vm1, %v1229_v40, %v1231_v54  ;;  %v1290_v63 = vsel %vm1285_vm5, %v1287_v60, %v1289_v61  ;;  %v1288_v0 = vsel %vm1285_vm5, %v1286_v48, %v1287_v60  ;;  %v1310_v3 = vsel %vm1307_vm6, %v1308_v49, %v1309_v1 }
 0x173   : > { %v1312_v4 = vsel %vm1307_vm6, %v1309_v1, %v1311_v2  ;;  %v2099_v2 = vld [vmem:[%s2826_s3 + $0x58] sm:$0xff]  }
 0x174   : > { %1215 = vrot.lane.b32.xlu1 %v1209_v51, %s2169_s6  ;;  %1558 = vmatpush1.bf16.msra.mxu1 %v2099_v2 }
 0x175   : > { %1255 = vrot.lane.b32.xlu0 %v1249_v52, %s2167_s23  ;;  %v1274_v52 = vsel %vm1269_vm8, %v1271_v47, %v1273_v46  ;;  %1559 = vmatprep.subr.bf16.mxu1 %v2170_v6 }
 0x178   : > { %1237 = vrot.lane.b32.xlu1 %v1231_v54, %s2168_s30  ;;  %v1272_v54 = vsel %vm1269_vm8, %v1270_v26, %v1271_v47 }
 0x179   : > { %1213 = vrot.lane.b32.xlu0 %v1210_v55, %s2169_s6 }
 0x17c   : > { %1253 = vrot.lane.b32.xlu1 %v1250_v58, %s2167_s23 }
 0x17d   : > { %1235 = vrot.lane.b32.xlu0 %v1232_v59, %s2168_s30 }
 0x180   : > { %1295 = vrot.lane.b32.xlu1 %v1290_v63, %s2169_s6 }
 0x181   : > { %1293 = vrot.lane.b32.xlu0 %v1288_v0, %s2169_s6 }
 0x184   : > { %1315 = vrot.lane.b32.xlu1 %v1310_v3, %s2168_s30  ;;  %v2100_v3 = vld [vmem:[%s2826_s3 + $0x60] sm:$0xff]  }
 0x185   : > { %1317 = vrot.lane.b32.xlu0 %v1312_v4, %s2168_s30  ;;  %1560 = vmatpush1.bf16.msra.mxu1 %v2100_v3 }
 0x186   : > { %1561 = vmatprep.subr.bf16.mxu1 %v2170_v6 }
 0x189   : > { %1562 = vmatpush1.bf16.msra.mxu1 %v2101_v15 }
 0x1d9   : > { %v1252_v17 = vpop.permute.xlu0 %1251 }
 0x1da   : > { %v1234_v20 = vpop.permute.xlu1 %1233 }
 0x1dd   : > { %v1212_v19 = vpop.permute.xlu0 %1211 }
 0x1de   : > { %v1220_v21 = vadd.f32 %v1212_v19, %v1197_v18 }
 0x1e0   : > { %v1242_v23 = vadd.f32 %v1234_v20, %v1220_v21 }
 0x1e2   : > { %v1260_v24 = vadd.f32 %v1252_v17, %v1242_v23  ;;  %v1292_v25 = vpop.permute.xlu1 %1291 }
 0x1e3   : > { %v1314_v27 = vpop.permute.xlu0 %1313 }
 0x1e4   : > { %v1278_v29 = vadd.f32 %v1270_v26, %v1260_v24 }
 0x1e6   : > { %v1300_v30 = vadd.f32 %v1292_v25, %v1278_v29  ;;  %v1216_v31 = vpop.permute.xlu1 %1215 }
 0x1e7   : > { %v1256_v32 = vpop.permute.xlu0 %1255  ;;  %v1222_v36 = vadd.f32 %v1216_v31, %v1199_v35 }
 0x1e8   : > { %v1322_v34 = vadd.f32 %v1314_v27, %v1300_v30 }
 0x1ea   : > { %v1332_v37 = vadd.f32 %v1789_v33, %v1322_v34  ;;  %v1238_v38 = vpop.permute.xlu1 %1237 }
 0x1eb   : > { %v1214_v39 = vpop.permute.xlu0 %1213  ;;  %v1244_v40 = vadd.f32 %v1238_v38, %v1222_v36 }
 0x1ec   : > { %v1335_v42 = vmax.f32 %v1332_v37, 0.0  ;;  %v1221_v43 = vadd.f32 %v2660_v28, %v1214_v39 }
 0x1ed   : > { %v1262_v48 = vadd.f32 %v1256_v32, %v1244_v40 }
 0x1ee   : > { %1342 = vst.msk [vmem:[#allocation3 + $0x3] sm:$0xe0] %vm1341_vm7, %v1335_v42  ;;  %v1254_v44 = vpop.permute.xlu1 %1253 }
 0x1ef   : > { %v1236_v45 = vpop.permute.xlu0 %1235  ;;  %v1280_v55 = vadd.f32 %v1274_v52, %v1262_v48  ;;  %v1790_v52 = vld [vmem:[%s2827_s4] ss:$0 sm:$0xff] }
 0x1f0   : > { %v1243_v49 = vadd.f32 %v1236_v45, %v1221_v43 }
 0x1f2   : > { %v1261_v50 = vadd.f32 %v1254_v44, %v1243_v49  ;;  %v1296_v51 = vpop.permute.xlu1 %1295 }
 0x1f3   : > { %v1294_v53 = vpop.permute.xlu0 %1293  ;;  %v1302_v58 = vadd.f32 %v1296_v51, %v1280_v55 }
 0x1f4   : > { %v1279_v57 = vadd.f32 %v1272_v54, %v1261_v50 }
 0x1f6   : > { %v1301_v59 = vadd.f32 %v1294_v53, %v1279_v57  ;;  %v1316_v60 = vpop.permute.xlu1 %1315 }
 0x1f7   : > { %v1318_v28 = vpop.permute.xlu0 %1317 }
 0x1f8   : > { %v1323_v61 = vadd.f32 %v1316_v60, %v1301_v59  ;;  %v1324_v62 = vadd.f32 %v1318_v28, %v1302_v58 }
 0x1fa   : > { %v1333_v63 = vadd.f32 %v1789_v33, %v1323_v61  ;;  %v1334_v0 = vadd.f32 %v1789_v33, %v1324_v62 }
 0x1fc   : > { %v1336_v56 = vmax.f32 %v1333_v63, 0.0  ;;  %v1337_v1 = vmax.f32 %v1334_v0, 0.0 }
 0x1fe   : > { %1343 = vst.msk [vmem:[#allocation3 + $0xb] sm:$0xff] %vm1338_vm3, %v1336_v56 }
 0x1ff   : > { %1345 = vst.msk [vmem:[#allocation3 + $0x13] sm:$0x1f] %vm1344_vm9, %v1337_v1 }
 0x205   : > { %v1356_v4 = vld [vmem:[#allocation3 + $0xa] sm:$0xff] }
 0x206   : > { %v1357_v5 = vld [vmem:[#allocation3 + $0x12] sm:$0xff]  ;;  %v1348_v7 = vld [vmem:[#allocation3 + $0x6] sm:$0xff] }
 0x207   : > { %v1876_v8 = vpack.i.bf16 %v1357_v5, %v1356_v4  ;;  %v1349_v9 = vld [vmem:[#allocation3 + $0xe] sm:$0xff]  ;;  %v1346_v40 = vld [vmem:[#allocation3 + $0x5] sm:$0xff] }
 0x208   : > { %v1871_v10 = vpack.i.bf16 %v1349_v9, %v1348_v7  ;;  %v1358_v11 = vld [vmem:[#allocation3 + $0xb] sm:$0xff]  ;;  %v1359_v12 = vld [vmem:[#allocation3 + $0x13] sm:$0xff] }
 0x209   : > { %1877 = vrot.lane.b32.xlu0 %v1876_v8, %s2167_s23  ;;  %v1350_v13 = vld [vmem:[#allocation3 + $0x7] sm:$0xff]  ;;  %v1351_v14 = vld [vmem:[#allocation3 + $0xf] sm:$0xff]  ;;  %v1886_v16 = vpack.i.bf16 %v1359_v12, %v1358_v11 }
 0x20a   : > { %1872 = vrot.lane.b32.xlu1 %v1871_v10, %s2167_s23  ;;  %v1881_v17 = vpack.i.bf16 %v1351_v14, %v1350_v13  ;;  %v1352_v6 = vld [vmem:[#allocation3 + $0x8] sm:$0xff]  ;;  %v1353_v18 = vld [vmem:[#allocation3 + $0x10] sm:$0xff]  ;;  %s215_s23 = sand.u32 1, %s2156_s19  }
 0x20b   : > { %v1891_v19 = vpack.i.bf16 %v1353_v18, %v1352_v6  ;;  %v1354_v25 = vld [vmem:[#allocation3 + $0x9] sm:$0xff]  ;;  %v1355_v26 = vld [vmem:[#allocation3 + $0x11] sm:$0xff]  ;;  %s2782_s25 = scalar_lea.sflag [#allocation5], %s215_s23 }
 0x20c   : > { %v1347_v41 = vld [vmem:[#allocation3 + $0xd] sm:$0xff] }
 0x20d   : > { %1887 = vrot.lane.b32.xlu0 %v1886_v16, %s2168_s30 }
 0x20e   : > { %1882 = vrot.lane.b32.xlu1 %v1881_v17, %s2168_s30  ;;  %s1658_s30 = sshll.u32 %s215_s23, 4 }
 0x20f   : > { %s217_s12 = scalar_lea.vmem [#allocation4], %s1658_s30 }
 0x210   : > { %s1592_s13 = sshll.u32 %s217_s12, 4  ;;  %s2775_s13 = int_to_ptr.vmem [resolvable:$true] %s1592_s13 }
 0x211   : > { %s2102_s22 = scalar_lea.vmem %s2775_s13, 256  ;;  %p2109_p0 = scmp.lt.s32.totalorder %s2775_s13, %s2107_s7 }
 0x212   : > { %1892 = vrot.lane.b32.xlu1 %v1891_v19, %s2169_s6  ;;  %p2103_p11 = scmp.ne.s32.totalorder %s2775_s13, %s2102_s22  ;;  %p2110_p1 = scmp.lt.s32.totalorder %s2108_s8, %s2102_s22 }
 0x214   : > { %p2104_p12 = pnand %p2103_p11, %p2242_p5  ;;  %p2111_p2 = por %p2110_p1, %p2109_p0 }
 0x216   : > { %p2105_p13 = pneg %p2104_p12 }
 0x218   : > { %p2112_p3 = pnand %p2111_p2, %p2105_p13 }
 0x27b   : > { %v1878_v20 = vpop.permute.xlu0 %1877 }
 0x27c   : > { %v1873_v21 = vpop.permute.xlu1 %1872  ;;  %v1880_v22 = vunpack.i.h.bf16 %v1878_v20  ;;  %v1879_v23 = vunpack.i.l.bf16 %v1878_v20 }
 0x27d   : > { %v1875_v33 = vunpack.i.h.bf16 %v1873_v21  ;;  %v1874_v34 = vunpack.i.l.bf16 %v1873_v21 }
 0x27e   : > { %v1407_v31 = vsel %vm1338_vm3, %v1354_v25, %v1879_v23  ;;  %v1408_v32 = vsel %vm1338_vm3, %v1355_v26, %v1880_v22 }
 0x27f   : > { %v1888_v24 = vpop.permute.xlu0 %1887  ;;  %v1400_v43 = vsel %vm1338_vm3, %v1346_v40, %v1874_v34  ;;  %v1401_v44 = vsel %vm1338_vm3, %v1347_v41, %v1875_v33 }
 0x280   : > { %v1890_v27 = vunpack.i.h.bf16 %v1888_v24  ;;  %v1889_v29 = vunpack.i.l.bf16 %v1888_v24  ;;  %v1883_v30 = vpop.permute.xlu1 %1882 }
 0x281   : > { %v1885_v37 = vunpack.i.h.bf16 %v1883_v30  ;;  %v1884_v38 = vunpack.i.l.bf16 %v1883_v30 }
 0x282   : > { %v1409_v35 = vsel %vm1402_vm10, %v1407_v31, %v1889_v29  ;;  %v1410_v36 = vsel %vm1402_vm10, %v1408_v32, %v1890_v27 }
 0x283   : > { %v1412_v39 = vpack.c.bf16 %v1410_v36, %v1409_v35  ;;  %v1403_v47 = vsel %vm1402_vm10, %v1400_v43, %v1884_v38  ;;  %v1404_v48 = vsel %vm1402_vm10, %v1401_v44, %v1885_v37 }
 0x284   : > { %v1893_v42 = vpop.permute.xlu1 %1892 }
 0x285   : > { %v1895_v45 = vunpack.i.h.bf16 %v1893_v42  ;;  %v1894_v46 = vunpack.i.l.bf16 %v1893_v42  ;;  %1805 = vmatprep.mubr.msk.bf16.mxu1 %vm1189_vm0, %v1412_v39 }
 0x287   : > { %v1405_v49 = vsel %vm1189_vm0, %v1403_v47, %v1894_v46  ;;  %v1406_v50 = vsel %vm1189_vm0, %v1404_v48, %v1895_v45 }
 0x288   : > { %v1411_v51 = vpack.c.bf16 %v1406_v50, %v1405_v49 }
 0x28a   : > { %1568 = vmatmul.mubr.bf16.vlgmr.msra.gmra.mrb[4].mxu1 %v1411_v51 }
 0x35d   : > { %v1569_v53 = vpop.f32.mrb[4].mxu1 }
 0x35e   : > { %v1570_v54 = vadd.f32 %v1790_v52, %v1569_v53  ;;  %v1571_v55 = vpop.f32.mrb[5].mxu1 }
 0x35f   : > { %v1572_v57 = vpop.f32.mrb[6].mxu1 }
 0x360   : > { %1576 = vst [vmem:[%s217_s12] sm:$0xff] %v1570_v54  ;;  %v1573_v58 = vadd.f32 %v1790_v52, %v1572_v57  ;;  %v1574_v59 = vpop.f32.mrb[7].mxu1 }
 0x362   : > { %1577 = vst [vmem:[%s217_s12 + $0x8] sm:$0xff] %v1573_v58 }
 0x363   : > { %2115 = shalt.err (!%p2112_p3)
}
 0x364   : > { %s2116_s9 = scalar_lea.hbm %s2780_s15, 256  ;;  %s2120_s30 = scalar_lea.hbm %s2828_s5, 512 }
 0x365   : > { %p2117_p4 = scmp.ne.s32.totalorder %s2780_s15, %s2116_s9  ;;  %p2121_p9 = scmp.lt.u32.totalorder %s2780_s15, %s2828_s5 }
 0x366   : > { %p2122_p10 = scmp.lt.u32.totalorder %s2120_s30, %s2116_s9  ;;  %p2124_p12 = scmp.lt.u32.totalorder %s2116_s9, %s2780_s15 }
 0x367   : > { %p2118_p7 = pnand %p2117_p4, %p2242_p5 }
 0x368   : > { %p2123_p11 = por %p2122_p10, %p2121_p9 }
 0x369   : > { %p2119_p8 = pneg %p2118_p7 }
 0x36a   : > { %p2125_p13 = por %p2124_p12, %p2123_p11 }
 0x36c   : > { %p2126_p0 = pnand %p2125_p13, %p2119_p8 }
 0x36e   : > { %2129 = shalt.err (!%p2126_p0)
}
 0x36f   : > { %s2172_s12 = smov 128   ;;  %s2173_s14 = smov 8  }
 0x370   : > { %1825 = dma.vmem_to_hbm [thread:$0]  (%p2242_p5), %s2775_s13, 256, %s2780_s15, %s2782_s25, %s2172_s12, %s2172_s12, %s2173_s14  }
 0x371 PF: > { %p1831_p1 = scmp.ge.s32.totalorder %s2164_s21, 2  ;;  %s1607_s16 = sand.u32 1, %s2152_s18  }
 0x372   : > { %s1608_s17 = scalar_lea.sflag [#allocation5], %s1607_s16 }
 0x373   : > { %p1828_p2 = pnand %p1831_p1, %p2246_p6 }
 0x375   : > { %2147 = dma.done.wait (!%p1828_p2), %s1608_s17, 256  }
 0x376   : > { %2149 = vsyncadd (!%p1828_p2), %s1608_s17, 4294967040  ;;  %p15_p3 = scmp.ge.s32.totalorder %s2229_s24, 4   ;;  %s2831_s18 = smov %s2156_s19 }
 0x377   : > { %s2832_s19 = smov %s2160_s20  ;;  %s2833_s20 = smov %s2240_s27 }
 0x378   : > { %s2834_s21 = smov %s2229_s24  ;;  %17 = sbr.rel (!%p15_p3) target bundleno = 3 (0x3), region = 75 }
 0x37f   :  { %1613 = vsyncpa [#allocation5], 1 }
 0x380   :  { %1615 = vsyncpa [#allocation5 + $0x1], 1 }

</bundles_post_ra>
